<compile_context>
chip_gen: v5e
topology: v5e:2x2
jax: 0.10.0
libtpu: 0.0.40
codegen_flags: <defaults>
</compile_context>

<pallas_src>
import jax
import jax.numpy as jnp
from jax.experimental import pallas as pl
from jax.experimental.pallas import tpu as pltpu


def _identity_dma_kernel(x_hbm_ref, o_hbm_ref, sem):
    # Single HBM -> HBM copy of the whole array. No VMEM round-trip.
    cp = pltpu.make_async_copy(x_hbm_ref, o_hbm_ref, sem)
    cp.start()
    cp.wait()


def identity(x: jax.Array) -> jax.Array:
    """nn.Identity forward: returns the input unchanged (same shape & dtype).

    Implemented as a single HBM->HBM async copy inside a Pallas kernel, which
    is bounded only by HBM bandwidth on every TPU generation.
    """
    orig_shape = x.shape

    # 0-d scalars: give the DMA engine at least a 1-element buffer.
    x_in = x.reshape(1) if x.ndim == 0 else x

    out = pl.pallas_call(
        _identity_dma_kernel,
        out_shape=jax.ShapeDtypeStruct(x_in.shape, x_in.dtype),
        in_specs=[pl.BlockSpec(memory_space=pl.ANY)],   # raw HBM ref, no auto-DMA
        out_specs=pl.BlockSpec(memory_space=pl.ANY),    # raw HBM ref, no auto-DMA
        scratch_shapes=[pltpu.SemaphoreType.DMA],       # completion semaphore
    )(x_in)

    return out.reshape(orig_shape)


if __name__ == "__main__":
    key = jax.random.PRNGKey(0)
    # Shape straight from the nn.Identity docstring example: (128, 20).
    x = jax.random.normal(key, (128, 20), dtype=jnp.float32)

    y = identity(x)
    y = jax.block_until_ready(y)

    assert y.shape == x.shape, (y.shape, x.shape)
    assert y.dtype == x.dtype, (y.dtype, x.dtype)
    assert bool(jnp.array_equal(y, x)), "Identity output mismatch"

    # Also exercise a 1-D and a 0-d input to cover the general wrapper path.
    v = jax.random.normal(jax.random.PRNGKey(1), (37,), dtype=jnp.bfloat16)
    s = jnp.float32(3.5)
    assert bool(jnp.array_equal(identity(v), v))
    assert bool(jnp.array_equal(identity(s), s))

    print("KERNEL_OK")
</pallas_src>

<mosaic_0001>
module attributes {stable_mosaic.version = 11 : i64} {
  func.func @_identity_dma_kernel(%arg0: memref<128x20xf32, #tpu.memory_space<any>>, %arg1: memref<128x20xf32, #tpu.memory_space<any>>, %arg2: memref<!tpu.dma_semaphore, #tpu.memory_space<semaphore_mem>>) attributes {dimension_semantics = [], scalar_prefetch = 0 : i64, scratch_operands = 1 : i64, tpu.core_type = #tpu.core_type<tc>} {
    tpu.enqueue_dma source(%arg0 : memref<128x20xf32, #tpu.memory_space<any>>) target(%arg1 : memref<128x20xf32, #tpu.memory_space<any>>) target_semaphore(%arg2 : memref<!tpu.dma_semaphore, #tpu.memory_space<semaphore_mem>>)
    tpu.wait_dma2 semaphore(%arg2 : memref<!tpu.dma_semaphore, #tpu.memory_space<semaphore_mem>>) src(%arg0 : memref<128x20xf32, #tpu.memory_space<any>>) dst(%arg1 : memref<128x20xf32, #tpu.memory_space<any>>)
    return
  }
}

</mosaic_0001>

<bundles_post_ra>
// kernel: tpu_custom_call.1
= control target key start
LH: loop header
LB: loop body
LE: loop exit
PB: predicated region body
PF: predicated region fallthrough
CT: control target
= control target key end

     0   :  { %s176_s0 = inlined_call_operand.vmem [shape: f32[128,20], index: 0, kind: input, shape index: {}]   ;;  %s177_s1 = inlined_call_operand.vmem [shape: f32[128,20], index: 1, kind: output, shape index: {}]  }
   0x1   :  { %v16_v0 = vld [vmem:[%s176_s0] sm:$0xff]  ;;  %v18_v1 = vld [vmem:[%s176_s0 + $0x8] sm:$0xff]  ;;  %v20_v2 = vld [vmem:[%s176_s0 + $0x10] sm:$0xff] }
   0x2   :  { %17 = vst [vmem:[%s177_s1] sm:$0xff] %v16_v0  ;;  %v22_v3 = vld [vmem:[%s176_s0 + $0x18] sm:$0xff]  ;;  %v24_v4 = vld [vmem:[%s176_s0 + $0x20] sm:$0xff]  ;;  %v26_v5 = vld [vmem:[%s176_s0 + $0x28] sm:$0xff] }
   0x3   :  { %19 = vst [vmem:[%s177_s1 + $0x8] sm:$0xff] %v18_v1  ;;  %v28_v6 = vld [vmem:[%s176_s0 + $0x30] sm:$0xff]  ;;  %v30_v7 = vld [vmem:[%s176_s0 + $0x38] sm:$0xff]  ;;  %v32_v8 = vld [vmem:[%s176_s0 + $0x40] sm:$0xff] }
   0x4   :  { %21 = vst [vmem:[%s177_s1 + $0x10] sm:$0xff] %v20_v2  ;;  %v34_v9 = vld [vmem:[%s176_s0 + $0x48] sm:$0xff]  ;;  %v36_v10 = vld [vmem:[%s176_s0 + $0x50] sm:$0xff]  ;;  %v38_v11 = vld [vmem:[%s176_s0 + $0x58] sm:$0xff] }
   0x5   :  { %23 = vst [vmem:[%s177_s1 + $0x18] sm:$0xff] %v22_v3  ;;  %v40_v12 = vld [vmem:[%s176_s0 + $0x60] sm:$0xff]  ;;  %v42_v13 = vld [vmem:[%s176_s0 + $0x68] sm:$0xff]  ;;  %v44_v14 = vld [vmem:[%s176_s0 + $0x70] sm:$0xff] }
   0x6   :  { %25 = vst [vmem:[%s177_s1 + $0x20] sm:$0xff] %v24_v4  ;;  %v46_v15 = vld [vmem:[%s176_s0 + $0x78] sm:$0xff] }
   0x7   :  { %27 = vst [vmem:[%s177_s1 + $0x28] sm:$0xff] %v26_v5 }
   0x8   :  { %29 = vst [vmem:[%s177_s1 + $0x30] sm:$0xff] %v28_v6 }
   0x9   :  { %31 = vst [vmem:[%s177_s1 + $0x38] sm:$0xff] %v30_v7 }
   0xa   :  { %33 = vst [vmem:[%s177_s1 + $0x40] sm:$0xff] %v32_v8 }
   0xb   :  { %35 = vst [vmem:[%s177_s1 + $0x48] sm:$0xff] %v34_v9 }
   0xc   :  { %37 = vst [vmem:[%s177_s1 + $0x50] sm:$0xff] %v36_v10 }
   0xd   :  { %39 = vst [vmem:[%s177_s1 + $0x58] sm:$0xff] %v38_v11 }
   0xe   :  { %41 = vst [vmem:[%s177_s1 + $0x60] sm:$0xff] %v40_v12 }
   0xf   :  { %43 = vst [vmem:[%s177_s1 + $0x68] sm:$0xff] %v42_v13 }
  0x10   :  { %45 = vst [vmem:[%s177_s1 + $0x70] sm:$0xff] %v44_v14 }
  0x11   :  { %47 = vst [vmem:[%s177_s1 + $0x78] sm:$0xff] %v46_v15 }
  0x12   :  { %53 = vsyncadd [#allocation2], 2048 }
  0x13   :  { %68 = dma.done.wait [#allocation2], 2048 }
  0x14   :  { %69 = vsyncadd [#allocation2], 4294965248 }
  0x15   :  { %57 = vsyncmov [#allocation2] }
  0x18   :  { %s58_s12 = vpop.sfrf %57 }
  0x19   :  { %p67_p0 = scmp.ne.s32.totalorder %s58_s12, 0 }
  0x1b   :  { %62 = shalt.err (%p67_p0)  }

</bundles_post_ra>
